<compile_context>
chip_gen: v7x
topology: tpu7x:2x2x1
jax: 0.10.0
libtpu: 0.0.40
codegen_flags: <defaults>
</compile_context>

<pallas_src>
import math

import jax
import jax.numpy as jnp
from jax.experimental import pallas as pl
from jax.experimental.pallas import tpu as pltpu

# --- module constants (from model.py) ---
Nc = 32
Nt = 32
batch_size = 16
encoded_dim = 32

H = Nc
W = Nt
HW = H * W                    # 1024 (power of two -> bit-mask index math)
M = batch_size * HW           # 16384  flattened (N, H, W) axis == lane axis
OUT_FEATS = 2 * Nc * Nt       # 2048

BN_EPS = 1e-5
LRELU_SLOPE = 0.3

# Per-refinenet conv layout: (cin_real, cout_real, cin_padded, cout_padded).
# The 2-channel tensors are padded to 8 channels so all tap pieces and dot
# operands are sublane-tile (8) aligned.
_CONV_LAYOUT = ((2, 8, 8, 8), (8, 16, 8, 16), (16, 2, 16, 8))
_ROW_STRIDE = 16              # rows reserved per conv in the packed slabs
_W_COLS = 9 * 16              # 144 = widest (Cout, 9*Cin) weight matrix
_N_CONVS = 6

_COMPILER_PARAMS = pltpu.CompilerParams(
    dimension_semantics=("arbitrary",),
    vmem_limit_bytes=32 * 1024 * 1024,   # v7x-safe; actual peak ~16 MiB
)

# ------------------- pltpu.roll sign-convention probe ------------------------
# The kernel needs y[:, m] = x[:, m + s].  With jnp.roll semantics that is
# roll(x, -s).  Probe the real lowering once (outside jit) to be robust.
_ROLL_SIGN = None


def _probe_roll_sign():
    global _ROLL_SIGN
    if _ROLL_SIGN is not None:
        return _ROLL_SIGN

    def k(x_ref, o_ref):
        o_ref[...] = pltpu.roll(x_ref[...], 1, 1)

    x = jnp.broadcast_to(jnp.arange(128, dtype=jnp.float32), (8, 128))
    y = pl.pallas_call(k, out_shape=jax.ShapeDtypeStruct((8, 128), jnp.float32))(x)
    first = float(y[0, 0])
    # jnp.roll convention: y[0,0] == x[0,127] == 127 -> sign +1
    _ROLL_SIGN = -1 if first == 1.0 else 1
    return _ROLL_SIGN


def _tap_shift(s):
    """Static roll amount so that roll(x, amt)[:, m] == x[:, m + s]."""
    sign = _ROLL_SIGN if _ROLL_SIGN is not None else 1
    return (-sign * s) % M


# ------------------------------ fused kernel --------------------------------

def _decoder_kernel(x_ref, w_ref, p_ref, o_ref, taps_ref):
    """Six fused Conv3x3+BN+LeakyReLU stages + 2 residual adds, all in VMEM.

    Layouts:
      x_ref    : (8, M) channel-major activations, m = n*H*W + h*W + w,
                 channels 2..7 zero-padded.
      w_ref    : (96, 144) packed conv weights; conv i occupies rows
                 [16*i, 16*i + cout_pad), cols [0, 9*cin_pad); column
                 t*cin_pad + ci holds W[co, ci, dy+1, dx+1], t = (dy+1)*3+(dx+1).
      p_ref    : (96, 4) packed [conv bias, BN gamma, BN beta, 0] rows.
      o_ref    : (2, M) lane-dense output slab (channel-major).
      taps_ref : (144, M) VMEM scratch for the stacked tap tensor, reused by
                 all six convs.
    """
    # Combined boundary masks per tap, built once (HW, W are powers of two).
    m_idx = jax.lax.broadcasted_iota(jnp.int32, (1, M), 1)
    hw_idx = jnp.bitwise_and(m_idx, HW - 1)          # h*W + w
    col_idx = jnp.bitwise_and(m_idx, W - 1)          # w
    row_ok = {-1: hw_idx >= W, 0: None, 1: hw_idx < HW - W}
    col_ok = {-1: col_idx > 0, 0: None, 1: col_idx < W - 1}
    tap_mask = []
    for dy in (-1, 0, 1):
        for dx in (-1, 0, 1):
            r, c = row_ok[dy], col_ok[dx]
            if r is None:
                tap_mask.append(c)
            elif c is None:
                tap_mask.append(r)
            else:
                tap_mask.append(jnp.logical_and(r, c))

    w_all = w_ref[...]
    p_all = p_ref[...]
    inv_m = 1.0 / float(M)

    def conv_bn_lrelu(x, idx, cin_p, cout_p):
        # ---- in-VMEM im2col: stacked (9*cin_p, M) tap tensor ---------------
        t = 0
        for dy in (-1, 0, 1):
            for dx in (-1, 0, 1):
                s = dy * W + dx                        # tap reads x[:, m + s]
                piece = x if s == 0 else pltpu.roll(x, _tap_shift(s), 1)
                if tap_mask[t] is not None:            # zero out-of-image taps
                    piece = jnp.where(tap_mask[t], piece, 0.0)
                taps_ref[t * cin_p:(t + 1) * cin_p, :] = piece
                t += 1

        # ---- single MXU dot: (cout_p, 9*cin_p) @ (9*cin_p, M) --------------
        r0 = idx * _ROW_STRIDE
        wmat = w_all[r0:r0 + cout_p, 0:9 * cin_p]
        pv = p_all[r0:r0 + cout_p, :]
        y = jnp.dot(wmat, taps_ref[0:9 * cin_p, :],
                    preferred_element_type=jnp.float32)
        y = y + pv[:, 0:1]                             # conv bias

        # ---- BatchNorm2d: training-mode biased batch stats over (N,H,W) ----
        # Two-pass (centered) variance; the centered tensor is reused for the
        # normalisation so it costs nothing extra.
        mean = jnp.sum(y, axis=1, keepdims=True) * inv_m
        yc = y - mean
        var = jnp.sum(yc * yc, axis=1, keepdims=True) * inv_m
        y = yc * (jax.lax.rsqrt(var + BN_EPS) * pv[:, 1:2]) + pv[:, 2:3]

        # ---- LeakyReLU(0.3) -------------------------------------------------
        return jnp.maximum(y, LRELU_SLOPE * y)

    act = x_ref[...]                                   # (8, M), rows 2..7 zero
    for r in range(2):                                 # two Refinenets
        skip = act
        h = conv_bn_lrelu(act, 3 * r + 0, 8, 8)        # conv 2->8  (cin padded)
        h = conv_bn_lrelu(h, 3 * r + 1, 8, 16)         # conv 8->16
        h = conv_bn_lrelu(h, 3 * r + 2, 16, 8)         # conv 16->2 (cout padded)
        act = h + skip                                 # residual add
    o_ref[...] = act[0:2, :]


# ------------------------------- wrapper -------------------------------------

def _pack_conv_params(params):
    """Pack the 6 convs' weights and (bias, gamma, beta) into two slabs."""
    w_slab = jnp.zeros((_N_CONVS * _ROW_STRIDE, _W_COLS), jnp.float32)
    p_slab = jnp.zeros((_N_CONVS * _ROW_STRIDE, 4), jnp.float32)
    idx = 0
    for rname in ("refine1", "refine2"):
        for li, cname in enumerate(("conv1", "conv2", "conv3")):
            w, b, g, beta = params[rname][cname]
            cin, cout, cin_p, cout_p = _CONV_LAYOUT[li]
            wp = jnp.zeros((cout_p, cin_p, 3, 3), jnp.float32)
            wp = wp.at[:cout, :cin].set(w)
            wmat = jnp.transpose(wp, (0, 2, 3, 1)).reshape(cout_p, 9 * cin_p)
            pv = jnp.zeros((cout_p, 4), jnp.float32)
            pv = pv.at[:cout, 0].set(b).at[:cout, 1].set(g).at[:cout, 2].set(beta)
            r0 = idx * _ROW_STRIDE
            w_slab = w_slab.at[r0:r0 + cout_p, 0:9 * cin_p].set(wmat)
            p_slab = p_slab.at[r0:r0 + cout_p, :].set(pv)
            idx += 1
    return w_slab, p_slab


def decoder_forward(params, x):
    """x: (batch_size, encoded_dim) -> (batch_size, 2, Nc, Nt)."""
    # Tiny fc + layout plumbing in plain XLA (~128 KB), per the perf review.
    fc_out = x @ params["fc_w"].T + params["fc_b"]                   # (B, 2*HW)
    act = fc_out.reshape(batch_size, 2, HW).transpose(1, 0, 2).reshape(2, M)
    act = jnp.pad(act, ((0, 6), (0, 0)))                             # (8, M)

    w_slab, p_slab = _pack_conv_params(params)

    out = pl.pallas_call(
        _decoder_kernel,
        out_shape=jax.ShapeDtypeStruct((2, M), jnp.float32),
        grid=(1,),
        in_specs=[
            pl.BlockSpec((8, M), lambda i: (0, 0)),
            pl.BlockSpec((_N_CONVS * _ROW_STRIDE, _W_COLS), lambda i: (0, 0)),
            pl.BlockSpec((_N_CONVS * _ROW_STRIDE, 4), lambda i: (0, 0)),
        ],
        out_specs=pl.BlockSpec((2, M), lambda i: (0, 0)),
        scratch_shapes=[pltpu.VMEM((9 * 16, M), jnp.float32)],
        compiler_params=_COMPILER_PARAMS,
    )(act, w_slab, p_slab)

    # Lane-dense (2, M) slab -> NCHW (free-ish reshape/transpose in XLA).
    return out.reshape(2, batch_size, Nc, Nt).transpose(1, 0, 2, 3)


# ----------------------- deterministic parameter init -----------------------

def init_params(key):
    keys = iter(jax.random.split(key, 64))

    def uniform(shape, bound):
        return jax.random.uniform(next(keys), shape, jnp.float32, -bound, bound)

    def conv_params(cin, cout):
        bound = 1.0 / math.sqrt(cin * 9)
        return (
            uniform((cout, cin, 3, 3), bound),        # conv weight
            uniform((cout,), bound),                  # conv bias
            jnp.ones((cout,), jnp.float32),           # BN gamma
            jnp.zeros((cout,), jnp.float32),          # BN beta
        )

    bound_fc = 1.0 / math.sqrt(encoded_dim)
    params = {
        "fc_w": uniform((OUT_FEATS, encoded_dim), bound_fc),
        "fc_b": uniform((OUT_FEATS,), bound_fc),
    }
    for name in ("refine1", "refine2"):
        params[name] = {
            "conv1": conv_params(2, 8),
            "conv2": conv_params(8, 16),
            "conv3": conv_params(16, 2),
        }
    return params


# ----------------------------- pure-JAX reference ----------------------------

def _ref_conv_bn_lrelu(x, w, b, g, beta):
    y = jax.lax.conv_general_dilated(
        x, w, window_strides=(1, 1), padding="SAME",
        dimension_numbers=("NCHW", "OIHW", "NCHW"),
        precision=jax.lax.Precision.HIGHEST,
    )
    y = y + b.reshape(1, -1, 1, 1)
    mean = y.mean(axis=(0, 2, 3), keepdims=True)
    var = ((y - mean) ** 2).mean(axis=(0, 2, 3), keepdims=True)
    y = (y - mean) * jax.lax.rsqrt(var + BN_EPS) * g.reshape(1, -1, 1, 1)
    y = y + beta.reshape(1, -1, 1, 1)
    return jnp.where(y > 0, y, LRELU_SLOPE * y)


def ref_forward(params, x):
    out = x @ params["fc_w"].T + params["fc_b"]
    out = out.reshape(batch_size, 2, Nc, Nt)
    for name in ("refine1", "refine2"):
        skip = out
        p = params[name]
        out = _ref_conv_bn_lrelu(out, *p["conv1"])
        out = _ref_conv_bn_lrelu(out, *p["conv2"])
        out = _ref_conv_bn_lrelu(out, *p["conv3"]) + skip
    return out


# ---------------------------------- main -------------------------------------

if __name__ == "__main__":
    _probe_roll_sign()            # resolve pltpu.roll convention before tracing

    key = jax.random.PRNGKey(0)
    pkey, xkey = jax.random.split(key)
    params = init_params(pkey)
    x = jax.random.normal(xkey, (batch_size, encoded_dim), jnp.float32)

    out = jax.jit(decoder_forward)(params, x)
    out = jax.block_until_ready(out)
    assert out.shape == (batch_size, 2, Nc, Nt), out.shape

    ref = ref_forward(params, x)
    max_err = float(jnp.max(jnp.abs(out - ref)))
    rel_rms = float(jnp.linalg.norm(out - ref) / jnp.linalg.norm(ref))
    # Kernel uses default (single-pass bf16) MXU precision vs. an f32 HIGHEST
    # reference: expect ~3e-3 relative RMS.  Any structural bug (taps/masks/BN)
    # would produce O(1) errors, so these bounds remain a real bug-catcher.
    assert rel_rms < 2e-2 and max_err < 1e-1, (rel_rms, max_err)

    print("KERNEL_OK")
</pallas_src>

<mosaic_0001>
module attributes {stable_mosaic.version = 11 : i64} {
  func.func @k(%arg0: memref<8x128xf32, #tpu.memory_space<vmem>>, %arg1: memref<8x128xf32, #tpu.memory_space<vmem>>) attributes {dimension_semantics = [], scalar_prefetch = 0 : i64, scratch_operands = 0 : i64, tpu.core_type = #tpu.core_type<tc>} {
    %c0 = arith.constant 0 : index
    %c0_0 = arith.constant 0 : index
    %0 = vector.load %arg0[%c0, %c0_0] : memref<8x128xf32, #tpu.memory_space<vmem>>, vector<8x128xf32>
    %c1_i32 = arith.constant 1 : i32
    %1 = tpu.dynamic_rotate %0 by %c1_i32 dim 1 : vector<8x128xf32>, i32 -> vector<8x128xf32>
    %c0_1 = arith.constant 0 : index
    %c0_2 = arith.constant 0 : index
    %2 = vector.load %arg1[%c0_1, %c0_2] : memref<8x128xf32, #tpu.memory_space<vmem>>, vector<8x128xf32>
    tpu.vector_store %arg1[%c0_1, %c0_2], %1 {strides = array<i32>} : memref<8x128xf32, #tpu.memory_space<vmem>>, vector<8x128xf32>,
    return
  }
}

</mosaic_0001>

<bundles_post_ra>
// kernel: tpu_custom_call.1
= control target key start
LH: loop header
LB: loop body
LE: loop exit
PB: predicated region body
PF: predicated region fallthrough
CT: control target
= control target key end

     0   :  { %6 = vsyncpa [#allocation3], 0  ;;  %s128_s0 = inlined_call_operand.hbm [shape: f32[8,128], index: 0, kind: input, shape index: {}]   ;;  %s129_s1 = inlined_call_operand.hbm [shape: f32[8,128], index: 1, kind: output, shape index: {}]  }
   0x1   :  { %7 = vsyncpa [#allocation4], 0  ;;  %s91_s6 = smov [#allocation2]   ;;  %s43_s10 = scalar_lea.hbm %s128_s0, 128 }
   0x2   :  { %s14_s7 = sshll.u32 %s91_s6, 4  ;;  %p44_p0 = scmp.ne.s32.totalorder %s128_s0, %s43_s10  ;;  %s15_s7 = int_to_ptr.vmem [resolvable:$true] %s14_s7 }
   0x3   :  { %p47_p1 = scmp.lt.u32.totalorder %s43_s10, %s128_s0 }
   0x5   :  { %p49_p2 = pnand %p47_p1, %p44_p0 }
   0x7   :  { %52 = shalt.err (!%p49_p2)
}
   0x8   :  { %s53_s15 = scalar_lea.vmem %s15_s7, 128  ;;  %p58_p4 = scmp.lt.s32.totalorder %s15_s7, %s15_s7 }
   0x9   :  { %p54_p3 = scmp.ne.s32.totalorder %s15_s7, %s53_s15  ;;  %p59_p5 = scmp.lt.s32.totalorder %s53_s15, %s53_s15 }
   0xb   :  { %p60_p6 = por %p59_p5, %p58_p4 }
   0xd   :  { %p61_p7 = pnand %p60_p6, %p54_p3 }
   0xf   :  { %64 = shalt.err (!%p61_p7)
}
  0x10   :  { %17 = dma.hbm_to_vmem [thread:$0]  %s128_s0, 128, %s15_s7, [#allocation3]  }
  0x11   :  { %87 = dma.done.wait [#allocation3], 128  }
  0x12   :  { %88 = vsyncadd [#allocation3], 4294967168  ;;  %v21_v0 = vld [vmem:[#allocation2] sm:$0xff]  ;;  %s92_s18 = smov 1   ;;  %s93_s19 = smov [#allocation5]  }
  0x13   :  { %22 = vrot.lane.b32.xlu0 %v21_v0, %s92_s18  ;;  %s31_s20 = sshll.u32 %s93_s19, 4  ;;  %s32_s20 = int_to_ptr.vmem [resolvable:$true] %s31_s20 }
  0x14   :  { %s65_s21 = scalar_lea.vmem %s32_s20, 128  ;;  %p70_p9 = scmp.lt.s32.totalorder %s32_s20, %s32_s20 }
  0x15   :  { %p66_p8 = scmp.ne.s32.totalorder %s32_s20, %s65_s21  ;;  %p71_p10 = scmp.lt.s32.totalorder %s65_s21, %s65_s21 }
  0x17   :  { %p72_p11 = por %p71_p10, %p70_p9 }
  0x19   :  { %p73_p12 = pnand %p72_p11, %p66_p8 }
  0x85   :  { %v23_v1 = vpop.permute.xlu0 %22 }
  0x86   :  { %24 = vst [vmem:[#allocation5] sm:$0xff] %v23_v1 }
  0x87   :  { %76 = shalt.err (!%p73_p12)
}
  0x88   :  { %s77_s0 = scalar_lea.hbm %s129_s1, 128 }
  0x89   :  { %p78_p13 = scmp.ne.s32.totalorder %s129_s1, %s77_s0  ;;  %p81_p0 = scmp.lt.u32.totalorder %s77_s0, %s129_s1 }
  0x8b   :  { %p83_p1 = pnand %p81_p0, %p78_p13 }
  0x8d   :  { %86 = shalt.err (!%p83_p1)
}
  0x8e   :  { %34 = dma.vmem_to_hbm [thread:$0]  %s32_s20, 128, %s129_s1, [#allocation4]  }
  0x8f   :  { %89 = dma.done.wait [#allocation4], 128  }
  0x90   :  { %90 = vsyncadd [#allocation4], 4294967168 }
  0x91   :  { %38 = vsyncpa [#allocation3], 1 }
  0x92   :  { %39 = vsyncpa [#allocation4], 1 }

</bundles_post_ra>
